<compile_context>
chip_gen: v7x
topology: tpu7x:2x2x1
jax: 0.10.0
libtpu: 0.0.40
codegen_flags: <defaults>
</compile_context>

<pallas_src>
import jax
import jax.numpy as jnp
from jax.experimental import pallas as pl
from jax.experimental.pallas import tpu as pltpu

_LANE = 128          # TPU lane width.
_BF16_SUBLANE = 16   # bf16 sublane packing (2 rows per 8 sublanes).


def _round_up(n: int, m: int) -> int:
    return ((n + m - 1) // m) * m


def _mlp_kernel(num_hidden: int):
    """relu(x@W1+b1) ... relu(.@Wk+bk) @ Wout + bout; bf16 matmuls, f32 accum."""

    def kernel(*refs):
        x_ref = refs[0]
        o_ref = refs[-1]
        p = refs[1:-1]  # (w1, b1, w2, b2, ..., w_out, b_out)

        h = x_ref[...]                              # bf16 [tb, state_pad]
        for i in range(num_hidden):
            w = p[2 * i][...]                       # bf16 [din_pad, dout_pad]
            b = p[2 * i + 1][...]                   # f32  [1, dout_pad]
            acc = jnp.dot(h, w, preferred_element_type=jnp.float32) + b
            h = jnp.maximum(acc, 0.0).astype(jnp.bfloat16)
        w_out = p[2 * num_hidden][...]
        b_out = p[2 * num_hidden + 1][...]
        out = jnp.dot(h, w_out, preferred_element_type=jnp.float32) + b_out
        o_ref[...] = out.astype(o_ref.dtype)

    return kernel


class PallasQNetwork:
    """Fused Pallas forward of CustomQNetwork.

    params: list of (W [in, out] f32, b [1, out] f32) for each hidden layer
    followed by the output layer (torch weights transposed).
    """

    def __init__(self, params, *, block_batch: int = 1024,
                 out_dtype=jnp.bfloat16):
        self.num_hidden = len(params) - 1
        self.state_dim = int(params[0][0].shape[0])
        self.action_dim = int(params[-1][0].shape[1])
        self.block_batch = int(block_batch)
        self.out_dtype = out_dtype

        # ---- one-time parameter padding / bf16 cast (hoisted out of call) ----
        # Input feature dim is only sublane-rounded so the streamed x stays
        # narrow; all other feature dims are lane-padded to 128 so MXU operands
        # are lane-dense and stores are unmasked.
        flat = []
        prev_pad = _round_up(self.state_dim, _BF16_SUBLANE)
        self.state_pad = prev_pad
        for w, b in params:
            din, dout = w.shape
            dout_p = _round_up(dout, _LANE)
            w_p = (jnp.zeros((prev_pad, dout_p), jnp.float32)
                   .at[:din, :dout].set(w).astype(jnp.bfloat16))
            b_p = (jnp.zeros((1, dout_p), jnp.float32)
                   .at[:, :dout].set(b.reshape(1, -1)))
            flat.extend([w_p, b_p])
            prev_pad = dout_p
        self.out_pad = prev_pad
        self._flat = tuple(jax.device_put(a) for a in flat)

        self._apply = jax.jit(self._forward)

    def _vmem_ceiling(self) -> int:
        """Generation-aware scoped-VMEM ceiling (headroom below physical)."""
        try:
            cap = int(pltpu.get_tpu_info().vmem_capacity_bytes)
        except Exception:
            cap = 64 * 1024 * 1024  # assume the smallest (v7x per-core) VMEM
        if cap >= 128 * 1024 * 1024:        # v5e / v6e
            return 100 * 1024 * 1024
        return 56 * 1024 * 1024             # v7x

    def _forward(self, x, flat):
        batch = x.shape[0]
        # Batch tile: multiple of 16 (bf16 sublanes); block_batch=1024 is a
        # multiple of 256 (v6e/v7x MXU M dim) for large batches.
        tb = min(self.block_batch, _round_up(batch, _BF16_SUBLANE))
        batch_pad = _round_up(batch, tb)
        grid_n = batch_pad // tb

        x_p = (jnp.zeros((batch_pad, self.state_pad), jnp.bfloat16)
               .at[:batch, :self.state_dim].set(x.astype(jnp.bfloat16)))

        # x/out tiled over batch; params resident (constant index map) and
        # single-buffered so they are not duplicated in VMEM.
        x_mode = pl.Buffered(3) if grid_n >= 3 else None
        in_specs = [pl.BlockSpec((tb, self.state_pad), lambda i: (i, 0),
                                 pipeline_mode=x_mode)]
        for a in flat:
            in_specs.append(pl.BlockSpec(a.shape, lambda i: (0, 0),
                                         pipeline_mode=pl.Buffered(1)))
        out_spec = pl.BlockSpec((tb, self.out_pad), lambda i: (i, 0))

        # ---- exact VMEM budget ------------------------------------------------
        param_bytes = sum(a.size * a.dtype.itemsize for a in flat)
        n_x_buf = 3 if grid_n >= 3 else 2
        x_tile_bytes = n_x_buf * tb * self.state_pad * 2
        out_tile_bytes = 2 * tb * self.out_pad * jnp.dtype(self.out_dtype).itemsize
        max_width = max(a.shape[-1] for a in flat)
        interm_bytes = 2 * tb * max_width * (4 + 2)      # f32 acc + bf16 act, 2x slack
        needed = (param_bytes + x_tile_bytes + out_tile_bytes
                  + interm_bytes + (2 << 20))
        vmem_limit = int(min(self._vmem_ceiling(), max(needed, 16 << 20)))
        # TODO(synk): if `needed` exceeds the per-generation ceiling (very wide
        # hidden layers on v7x's 64 MiB VMEM), fall back to streaming one
        # layer's weights at a time with pltpu.emit_pipeline instead of keeping
        # all weights resident.

        n_layers = len(flat) // 2
        flops = 2 * batch_pad * sum(flat[2 * i].shape[0] * flat[2 * i].shape[1]
                                    for i in range(n_layers))
        bytes_accessed = (x_p.size * 2 + param_bytes
                          + batch_pad * self.out_pad
                          * jnp.dtype(self.out_dtype).itemsize)

        fn = pl.pallas_call(
            _mlp_kernel(self.num_hidden),
            out_shape=jax.ShapeDtypeStruct((batch_pad, self.out_pad),
                                           self.out_dtype),
            grid=(grid_n,),
            in_specs=in_specs,
            out_specs=out_spec,
            compiler_params=pltpu.CompilerParams(
                dimension_semantics=("parallel",),   # megacore sharding on v7x
                vmem_limit_bytes=vmem_limit),
            cost_estimate=pl.CostEstimate(
                flops=int(flops), transcendentals=0,
                bytes_accessed=int(bytes_accessed)),
        )
        out = fn(x_p, *flat)
        return out[:batch, :self.action_dim]

    def __call__(self, x):
        return self._apply(x, self._flat)


def init_params(key, state_dim, action_dim, hidden_dims):
    """Deterministic init mimicking torch.nn.Linear default: U(-1/sqrt(fan_in), +)."""
    dims = [state_dim] + list(hidden_dims) + [action_dim]
    params = []
    for i in range(len(dims) - 1):
        fan_in, fan_out = dims[i], dims[i + 1]
        key, kw, kb = jax.random.split(key, 3)
        bound = 1.0 / jnp.sqrt(jnp.float32(fan_in))
        w = jax.random.uniform(kw, (fan_in, fan_out), jnp.float32, -bound, bound)
        b = jax.random.uniform(kb, (1, fan_out), jnp.float32, -bound, bound)
        params.append((w, b))
    return params


def reference_forward(x, params):
    h = x
    for w, b in params[:-1]:
        h = jnp.maximum(h @ w + b, 0.0)
    w, b = params[-1]
    return h @ w + b


if __name__ == "__main__":
    # CartPole-v1: state_dim=4, action_dim=2. Small hidden dims / batch for the
    # demo; in real RL usage batch thousands of states per call so the bf16 /
    # lane-dense / batch-tiling choices pay off.
    state_dim = 4
    action_dim = 2
    hidden_dims = [32, 32]
    batch = 4

    key = jax.random.PRNGKey(0)
    key, kx = jax.random.split(key)
    x = jax.random.normal(kx, (batch, state_dim), dtype=jnp.float32)
    params = init_params(key, state_dim, action_dim, hidden_dims)

    net = PallasQNetwork(params)          # params padded / cast exactly once
    out = jax.block_until_ready(net(x))

    ref = reference_forward(x, params)
    assert out.shape == (batch, action_dim)
    # bf16 matmuls + bf16 output with f32 accumulation: loose tolerance vs the
    # f32 reference (appropriate for RL acting; use out_dtype=f32 for parity).
    assert jnp.allclose(out.astype(jnp.float32), ref, atol=5e-2, rtol=5e-2), (out, ref)

    print("KERNEL_OK")
</pallas_src>

<mosaic_0001>
module attributes {stable_mosaic.version = 11 : i64} {
  func.func @kernel(%arg0: i32, %arg1: memref<16x16xbf16, #tpu.memory_space<vmem>>, %arg2: memref<16x128xbf16, #tpu.memory_space<vmem>>, %arg3: memref<1x128xf32, #tpu.memory_space<vmem>>, %arg4: memref<128x128xbf16, #tpu.memory_space<vmem>>, %arg5: memref<1x128xf32, #tpu.memory_space<vmem>>, %arg6: memref<128x128xbf16, #tpu.memory_space<vmem>>, %arg7: memref<1x128xf32, #tpu.memory_space<vmem>>, %arg8: memref<16x128xbf16, #tpu.memory_space<vmem>>) attributes {dimension_semantics = [#tpu.dimension_semantics<parallel>], iteration_bounds = array<i64: 1>, scalar_prefetch = 0 : i64, scratch_operands = 0 : i64, tpu.core_type = #tpu.core_type<tc>, window_params = [{transform_indices = @transform_0, window_bounds = array<i64: 16, 16>}, {pipeline_mode = #tpu.pipeline_mode<synchronous>, transform_indices = @transform_1, window_bounds = array<i64: 16, 128>}, {pipeline_mode = #tpu.pipeline_mode<synchronous>, transform_indices = @transform_2, window_bounds = array<i64: 1, 128>}, {pipeline_mode = #tpu.pipeline_mode<synchronous>, transform_indices = @transform_3, window_bounds = array<i64: 128, 128>}, {pipeline_mode = #tpu.pipeline_mode<synchronous>, transform_indices = @transform_4, window_bounds = array<i64: 1, 128>}, {pipeline_mode = #tpu.pipeline_mode<synchronous>, transform_indices = @transform_5, window_bounds = array<i64: 128, 128>}, {pipeline_mode = #tpu.pipeline_mode<synchronous>, transform_indices = @transform_6, window_bounds = array<i64: 1, 128>}, {transform_indices = @transform_7, window_bounds = array<i64: 16, 128>}]} {
    %c0 = arith.constant 0 : index
    %c0_0 = arith.constant 0 : index
    %0 = vector.load %arg1[%c0, %c0_0] : memref<16x16xbf16, #tpu.memory_space<vmem>>, vector<16x16xbf16>
    %c0_1 = arith.constant 0 : index
    %c0_2 = arith.constant 0 : index
    %1 = vector.load %arg2[%c0_1, %c0_2] : memref<16x128xbf16, #tpu.memory_space<vmem>>, vector<16x128xbf16>
    %c0_3 = arith.constant 0 : index
    %c0_4 = arith.constant 0 : index
    %2 = vector.load %arg3[%c0_3, %c0_4] : memref<1x128xf32, #tpu.memory_space<vmem>>, vector<1x128xf32>
    %cst = arith.constant dense<0.000000e+00> : vector<16x128xf32>
    %3 = tpu.matmul %0, %1, %cst {dimension_numbers = #tpu.dot_dimension_numbers<[1], [0], [0], [1], [0, 0, 1, 1], [], []>} : vector<16x16xbf16>, vector<16x128xbf16>, vector<16x128xf32> -> vector<16x128xf32>
    %4 = vector.broadcast %2 : vector<1x128xf32> to vector<16x128xf32>
    %5 = arith.addf %3, %4 : vector<16x128xf32>
    %cst_5 = arith.constant 0.000000e+00 : f32
    %6 = vector.broadcast %cst_5 : f32 to vector<16x128xf32>
    %7 = arith.maximumf %5, %6 : vector<16x128xf32>
    %8 = arith.truncf %7 : vector<16x128xf32> to vector<16x128xbf16>
    %c0_6 = arith.constant 0 : index
    %c0_7 = arith.constant 0 : index
    %9 = vector.load %arg4[%c0_6, %c0_7] : memref<128x128xbf16, #tpu.memory_space<vmem>>, vector<128x128xbf16>
    %c0_8 = arith.constant 0 : index
    %c0_9 = arith.constant 0 : index
    %10 = vector.load %arg5[%c0_8, %c0_9] : memref<1x128xf32, #tpu.memory_space<vmem>>, vector<1x128xf32>
    %cst_10 = arith.constant dense<0.000000e+00> : vector<16x128xf32>
    %11 = tpu.matmul %8, %9, %cst_10 {dimension_numbers = #tpu.dot_dimension_numbers<[1], [0], [0], [1], [0, 0, 1, 1], [], []>} : vector<16x128xbf16>, vector<128x128xbf16>, vector<16x128xf32> -> vector<16x128xf32>
    %12 = vector.broadcast %10 : vector<1x128xf32> to vector<16x128xf32>
    %13 = arith.addf %11, %12 : vector<16x128xf32>
    %cst_11 = arith.constant 0.000000e+00 : f32
    %14 = vector.broadcast %cst_11 : f32 to vector<16x128xf32>
    %15 = arith.maximumf %13, %14 : vector<16x128xf32>
    %16 = arith.truncf %15 : vector<16x128xf32> to vector<16x128xbf16>
    %c0_12 = arith.constant 0 : index
    %c0_13 = arith.constant 0 : index
    %17 = vector.load %arg6[%c0_12, %c0_13] : memref<128x128xbf16, #tpu.memory_space<vmem>>, vector<128x128xbf16>
    %c0_14 = arith.constant 0 : index
    %c0_15 = arith.constant 0 : index
    %18 = vector.load %arg7[%c0_14, %c0_15] : memref<1x128xf32, #tpu.memory_space<vmem>>, vector<1x128xf32>
    %cst_16 = arith.constant dense<0.000000e+00> : vector<16x128xf32>
    %19 = tpu.matmul %16, %17, %cst_16 {dimension_numbers = #tpu.dot_dimension_numbers<[1], [0], [0], [1], [0, 0, 1, 1], [], []>} : vector<16x128xbf16>, vector<128x128xbf16>, vector<16x128xf32> -> vector<16x128xf32>
    %20 = vector.broadcast %18 : vector<1x128xf32> to vector<16x128xf32>
    %21 = arith.addf %19, %20 : vector<16x128xf32>
    %22 = arith.truncf %21 : vector<16x128xf32> to vector<16x128xbf16>
    %c0_17 = arith.constant 0 : index
    %c0_18 = arith.constant 0 : index
    %23 = vector.load %arg8[%c0_17, %c0_18] : memref<16x128xbf16, #tpu.memory_space<vmem>>, vector<16x128xbf16>
    tpu.vector_store %arg8[%c0_17, %c0_18], %22 {strides = array<i32>} : memref<16x128xbf16, #tpu.memory_space<vmem>>, vector<16x128xbf16>,
    return
  }
  func.func @transform_0(%arg0: i32) -> (i32, i32) {
    %c0_i32 = arith.constant 0 : i32
    %c0_i32_0 = arith.constant 0 : i32
    return %arg0, %c0_i32 : i32, i32
  }
  func.func @transform_1(%arg0: i32) -> (i32, i32) {
    %c0_i32 = arith.constant 0 : i32
    %c0_i32_0 = arith.constant 0 : i32
    %c0_i32_1 = arith.constant 0 : i32
    return %c0_i32, %c0_i32_0 : i32, i32
  }
  func.func @transform_2(%arg0: i32) -> (i32, i32) {
    %c0_i32 = arith.constant 0 : i32
    %c0_i32_0 = arith.constant 0 : i32
    %c0_i32_1 = arith.constant 0 : i32
    return %c0_i32, %c0_i32_0 : i32, i32
  }
  func.func @transform_3(%arg0: i32) -> (i32, i32) {
    %c0_i32 = arith.constant 0 : i32
    %c0_i32_0 = arith.constant 0 : i32
    %c0_i32_1 = arith.constant 0 : i32
    return %c0_i32, %c0_i32_0 : i32, i32
  }
  func.func @transform_4(%arg0: i32) -> (i32, i32) {
    %c0_i32 = arith.constant 0 : i32
    %c0_i32_0 = arith.constant 0 : i32
    %c0_i32_1 = arith.constant 0 : i32
    return %c0_i32, %c0_i32_0 : i32, i32
  }
  func.func @transform_5(%arg0: i32) -> (i32, i32) {
    %c0_i32 = arith.constant 0 : i32
    %c0_i32_0 = arith.constant 0 : i32
    %c0_i32_1 = arith.constant 0 : i32
    return %c0_i32, %c0_i32_0 : i32, i32
  }
  func.func @transform_6(%arg0: i32) -> (i32, i32) {
    %c0_i32 = arith.constant 0 : i32
    %c0_i32_0 = arith.constant 0 : i32
    %c0_i32_1 = arith.constant 0 : i32
    return %c0_i32, %c0_i32_0 : i32, i32
  }
  func.func @transform_7(%arg0: i32) -> (i32, i32) {
    %c0_i32 = arith.constant 0 : i32
    %c0_i32_0 = arith.constant 0 : i32
    return %arg0, %c0_i32 : i32, i32
  }
}

</mosaic_0001>

<bundles_post_ra>
// kernel: _forward.1
= control target key start
LH: loop header
LB: loop body
LE: loop exit
PB: predicated region body
PF: predicated region fallthrough
CT: control target
= control target key end

     0   :  { %12 = vsyncpa [#allocation3], 0  ;;  %s645_s0 = inlined_call_operand.vmem [shape: bf16[16,16], index: 0, kind: input, shape index: {}]   ;;  %s646_s1 = inlined_call_operand.vmem [shape: bf16[16,128], index: 1, kind: input, shape index: {}]   ;;  %s647_s2 = inlined_call_operand.vmem [shape: f32[1,128], index: 2, kind: input, shape index: {}]   ;;  %s648_s3 = inlined_call_operand.hbm [shape: bf16[128,128], index: 3, kind: input, shape index: {}]   ;;  %s649_s4 = inlined_call_operand.vmem [shape: f32[1,128], index: 4, kind: input, shape index: {}]   ;;  %s650_s5 = inlined_call_operand.hbm [shape: bf16[128,128], index: 5, kind: input, shape index: {}]   ;;  %s651_s6 = inlined_call_operand.vmem [shape: f32[1,128], index: 6, kind: input, shape index: {}]   ;;  %s652_s7 = inlined_call_operand.vmem [shape: bf16[16,128], index: 7, kind: output, shape index: {}]  }
   0x1   :  { %13 = vsyncpa [#allocation5], 0  ;;  %s537_s24 = smov [#allocation2]   ;;  %s489_s28 = scalar_lea.hbm %s648_s3, 1024 }
   0x2   :  { %s25_s25 = sshll.u32 %s537_s24, 4  ;;  %p490_p0 = scmp.ne.s32.totalorder %s648_s3, %s489_s28  ;;  %s26_s25 = int_to_ptr.vmem [resolvable:$true] %s25_s25 }
   0x3   :  { %p493_p1 = scmp.lt.u32.totalorder %s489_s28, %s648_s3 }
   0x5   :  { %p495_p2 = pnand %p493_p1, %p490_p0 }
   0x7   :  { %498 = shalt.err (!%p495_p2)
}
   0x8   :  { %s499_s10 = scalar_lea.vmem %s26_s25, 1024  ;;  %p504_p4 = scmp.lt.s32.totalorder %s26_s25, %s26_s25 }
   0x9   :  { %p500_p3 = scmp.ne.s32.totalorder %s26_s25, %s499_s10  ;;  %p505_p5 = scmp.lt.s32.totalorder %s499_s10, %s499_s10 }
   0xb   :  { %p506_p6 = por %p505_p5, %p504_p4 }
   0xd   :  { %p507_p7 = pnand %p506_p6, %p500_p3 }
   0xf   :  { %510 = shalt.err (!%p507_p7)
}
  0x10   :  { %s538_s11 = smov 64   ;;  %s539_s12 = smov 4  }
  0x11   :  { %31 = dma.hbm_to_vmem [thread:$0]  %s648_s3, 1024, %s26_s25, [#allocation3], %s538_s11, %s538_s11, %s539_s12  }
  0x12   :  { %s540_s15 = smov [#allocation4]   ;;  %s511_s19 = scalar_lea.hbm %s650_s5, 1024 }
  0x13   :  { %s39_s16 = sshll.u32 %s540_s15, 4  ;;  %p512_p8 = scmp.ne.s32.totalorder %s650_s5, %s511_s19  ;;  %s40_s16 = int_to_ptr.vmem [resolvable:$true] %s39_s16 }
  0x14   :  { %p515_p9 = scmp.lt.u32.totalorder %s511_s19, %s650_s5 }
  0x16   :  { %p517_p10 = pnand %p515_p9, %p512_p8 }
  0x18   :  { %520 = shalt.err (!%p517_p10)
}
  0x19   :  { %s521_s24 = scalar_lea.vmem %s40_s16, 1024  ;;  %p526_p12 = scmp.lt.s32.totalorder %s40_s16, %s40_s16 }
  0x1a   :  { %p522_p11 = scmp.ne.s32.totalorder %s40_s16, %s521_s24  ;;  %p527_p13 = scmp.lt.s32.totalorder %s521_s24, %s521_s24 }
  0x1c   :  { %p528_p0 = por %p527_p13, %p526_p12 }
  0x1e   :  { %p529_p1 = pnand %p528_p0, %p522_p11 }
  0x20   :  { %532 = shalt.err (!%p529_p1)
}
  0x21   :  { %45 = dma.hbm_to_vmem [thread:$0]  %s650_s5, 1024, %s40_s16, [#allocation5], %s538_s11, %s538_s11, %s539_s12  }
  0x22   :  { %533 = dma.done.wait [#allocation3], 1024  }
  0x23   :  { %534 = vsyncadd [#allocation3], 4294966272 }
  0x24   :  { %535 = dma.done.wait [#allocation5], 1024  }
  0x25   :  { %536 = vsyncadd [#allocation5], 4294966272  ;;  %v541_v0 = vmov 0.0   ;;  %vm542_vm0 = vmmov 0   ;;  %v471_v1 = vld [vmem:[%s646_s1] sm:$0xff]   ;;  %vm77_vm1 = vcmask 130048  }
  0x26   :  { %419 = vmatprep.subr.bf16.mxu0 %v541_v0  ;;  %421 = vmatprep.mubr.msk.bf16.mxu0 %vm542_vm0, %v541_v0  ;;  %v472_v2 = vld [vmem:[%s645_s0] sm:$0xff]   ;;  %v474_v4 = vld [vmem:[#allocation2 + $0x8] sm:$0xff]   ;;  %v475_v5 = vld [vmem:[#allocation2 + $0x10] sm:$0xff]  }
  0x27   :  { %425 = vmatprep.subr.bf16.mxu1 %v541_v0  ;;  %441 = vmatprep.mubr.msk.bf16.mxu1 %vm542_vm0, %v541_v0  ;;  %v473_v3 = vld [vmem:[#allocation2] sm:$0xff]   ;;  %v476_v6 = vld [vmem:[#allocation2 + $0x18] sm:$0xff]   ;;  %v478_v8 = vld [vmem:[#allocation2 + $0x28] sm:$0xff]  }
  0x28   :  { %420 = vmatpush3.bf16.msra.mxu0 %v471_v1  ;;  %426 = vmatpush3.bf16.msra.mxu1 %v473_v3  ;;  %v477_v7 = vld [vmem:[#allocation2 + $0x20] sm:$0xff]   ;;  %v479_v9 = vld [vmem:[#allocation2 + $0x30] sm:$0xff]   ;;  %v480_v10 = vld [vmem:[#allocation2 + $0x38] sm:$0xff]  }
  0x29   :  { %445 = vmatprep.subr.bf16.mxu0 %v541_v0  ;;  %427 = vmatprep.subr.bf16.mxu1 %v541_v0  ;;  %v481_v11 = vld [vmem:[#allocation4] sm:$0xff]   ;;  %v482_v12 = vld [vmem:[#allocation4 + $0x8] sm:$0xff]   ;;  %v483_v13 = vld [vmem:[#allocation4 + $0x10] sm:$0xff]  }
  0x2a   :  { %v484_v14 = vld [vmem:[#allocation4 + $0x18] sm:$0xff]   ;;  %v485_v15 = vld [vmem:[#allocation4 + $0x20] sm:$0xff]   ;;  %v486_v16 = vld [vmem:[#allocation4 + $0x28] sm:$0xff]  }
  0x2b   :  { %422 = vmatmul.mubr.msk.bf16.vlgmr.msra.gmra.mrb[0].mxu0 %vm77_vm1, %v472_v2  ;;  %v368_v17 = vld [vmem:[%s647_s2] ss:$0 sm:$0xff]  ;;  %v487_v27 = vld [vmem:[#allocation4 + $0x30] sm:$0xff]   ;;  %v488_v28 = vld [vmem:[#allocation4 + $0x38] sm:$0xff]  }
  0x2c   :  { %461 = vmatprep.mubr.msk.bf16.mxu0 %vm542_vm0, %v541_v0  ;;  %428 = vmatpush3.bf16.msra.mxu1 %v474_v4  ;;  %v372_v29 = vld [vmem:[%s649_s4] ss:$0 sm:$0xff] }
  0x2d   :  { %429 = vmatprep.subr.bf16.mxu1 %v541_v0  ;;  %446 = vmatpush3.bf16.msra.mxu0 %v481_v11  ;;  %v381_v39 = vld [vmem:[%s651_s6] ss:$0 sm:$0xff] }
  0x2e   :  { %447 = vmatprep.subr.bf16.mxu0 %v541_v0 }
  0x30   :  { %430 = vmatpush3.bf16.msra.mxu1 %v475_v5 }
  0x31   :  { %431 = vmatprep.subr.bf16.mxu1 %v541_v0  ;;  %448 = vmatpush3.bf16.msra.mxu0 %v482_v12 }
  0x32   :  { %449 = vmatprep.subr.bf16.mxu0 %v541_v0 }
  0x34   :  { %432 = vmatpush3.bf16.msra.mxu1 %v476_v6 }
  0x35   :  { %433 = vmatprep.subr.bf16.mxu1 %v541_v0  ;;  %450 = vmatpush3.bf16.msra.mxu0 %v483_v13 }
  0x36   :  { %451 = vmatprep.subr.bf16.mxu0 %v541_v0 }
  0x38   :  { %434 = vmatpush3.bf16.msra.mxu1 %v477_v7 }
  0x39   :  { %435 = vmatprep.subr.bf16.mxu1 %v541_v0  ;;  %452 = vmatpush3.bf16.msra.mxu0 %v484_v14 }
  0x3a   :  { %453 = vmatprep.subr.bf16.mxu0 %v541_v0 }
  0x3c   :  { %436 = vmatpush3.bf16.msra.mxu1 %v478_v8 }
  0x3d   :  { %437 = vmatprep.subr.bf16.mxu1 %v541_v0  ;;  %454 = vmatpush3.bf16.msra.mxu0 %v485_v15 }
  0x3e   :  { %455 = vmatprep.subr.bf16.mxu0 %v541_v0 }
  0x40   :  { %438 = vmatpush3.bf16.msra.mxu1 %v479_v9 }
  0x41   :  { %439 = vmatprep.subr.bf16.mxu1 %v541_v0  ;;  %456 = vmatpush3.bf16.msra.mxu0 %v486_v16 }
  0x42   :  { %457 = vmatprep.subr.bf16.mxu0 %v541_v0 }
  0x44   :  { %440 = vmatpush3.bf16.msra.mxu1 %v480_v10 }
  0x45   :  { %458 = vmatpush3.bf16.msra.mxu0 %v487_v27 }
  0x46   :  { %459 = vmatprep.subr.bf16.mxu0 %v541_v0 }
  0x49   :  { %460 = vmatpush3.bf16.msra.mxu0 %v488_v28 }
  0xfe   :  { %v115_v18 = vpop.f32.mrb[0].mxu0 }
  0xff   :  { %v116_v19 = vadd.f32 %v368_v17, %v115_v18  ;;  %v423_v20 = vpop.f32.mrb[1].mxu0 }
 0x100   :  { %v118_v21 = vpop.f32.mrb[2].mxu0 }
 0x101   :  { %v119_v22 = vadd.f32 %v368_v17, %v118_v21  ;;  %v424_v23 = vpop.f32.mrb[3].mxu0  ;;  %v122_v24 = vmax.f32 %v116_v19, 0.0 }
 0x103   :  { %v123_v25 = vmax.f32 %v119_v22, 0.0 }
 0x105   :  { %v124_v26 = vpack.c.bf16 %v123_v25, %v122_v24 }
 0x107   :  { %442 = vmatmul.mubr.bf16.vlgmr.msra.gmra.mrb[0].mxu1 %v124_v26 }
 0x1da   :  { %v230_v30 = vpop.f32.mrb[0].mxu1 }
 0x1db   :  { %v231_v31 = vadd.f32 %v372_v29, %v230_v30  ;;  %v443_v32 = vpop.f32.mrb[1].mxu1 }
 0x1dc   :  { %v233_v33 = vpop.f32.mrb[2].mxu1 }
 0x1dd   :  { %v234_v34 = vadd.f32 %v372_v29, %v233_v33  ;;  %v444_v35 = vpop.f32.mrb[3].mxu1  ;;  %v237_v36 = vmax.f32 %v231_v31, 0.0 }
 0x1df   :  { %v238_v37 = vmax.f32 %v234_v34, 0.0 }
 0x1e1   :  { %v239_v38 = vpack.c.bf16 %v238_v37, %v237_v36 }
 0x1e3   :  { %462 = vmatmul.mubr.bf16.vlgmr.msra.gmra.mrb[4].mxu0 %v239_v38 }
 0x2b6   :  { %v345_v40 = vpop.f32.mrb[4].mxu0 }
 0x2b7   :  { %v463_v41 = vpop.f32.mrb[5].mxu0  ;;  %v346_v43 = vadd.f32 %v381_v39, %v345_v40 }
 0x2b8   :  { %v348_v42 = vpop.f32.mrb[6].mxu0 }
 0x2b9   :  { %v349_v44 = vadd.f32 %v381_v39, %v348_v42  ;;  %v464_v45 = vpop.f32.mrb[7].mxu0 }
 0x2bb   :  { %v397_v46 = vpack.c.bf16 %v349_v44, %v346_v43 }
 0x2bd   :  { %398 = vst [vmem:[%s652_s7] sm:$0xff] %v397_v46  }
 0x2be   :  { %366 = vsyncpa [#allocation3], 1 }
 0x2bf   :  { %367 = vsyncpa [#allocation5], 1 }

</bundles_post_ra>
